<compile_context>
chip_gen: v5e
topology: v5e:2x2
jax: 0.10.0
libtpu: 0.0.40
codegen_flags: <defaults>
</compile_context>

<pallas_src>
import jax
import jax.numpy as jnp
from jax.experimental import pallas as pl
from jax.experimental.pallas import tpu as pltpu


# ---------------------------------------------------------------------------
# Fused kernel: conv (matmul) + bias + ReLU + global-avg-pool accumulate + FC
# ---------------------------------------------------------------------------
def _make_fused_kernel(inv_hw):
    def kernel(p_ref, wc_ref, bc_ref, wf_ref, bf_ref, o_ref, acc_ref):
        # p_ref : (1, TILE_S, K)  bf16  im2col patches, one batch / spatial tile
        # wc_ref: (K, Np)         bf16  conv weight (N zero-padded to 128)
        # bc_ref: (1, Np)         f32   conv bias   (zero padded)
        # wf_ref: (Np, Dp)        f32   fc weight   (zero padded)
        # bf_ref: (1, Dp)         f32   fc bias     (zero padded)
        # o_ref : (1, 1, Dp)      f32   per-batch output row
        # acc_ref: (1, Np)        f32   running spatial sum (pooling accumulator)
        s = pl.program_id(1)

        @pl.when(s == 0)
        def _init():
            acc_ref[...] = jnp.zeros_like(acc_ref)

        x = p_ref[0]                                                 # (TILE_S, K) bf16
        conv = jnp.dot(x, wc_ref[...],
                       preferred_element_type=jnp.float32)           # (TILE_S, Np) f32
        act = jnp.maximum(conv + bc_ref[...], 0.0)                    # bias + ReLU (f32 VPU)
        acc_ref[...] += jnp.sum(act, axis=0, keepdims=True)           # pooling partial sum

        @pl.when(s == pl.num_programs(1) - 1)
        def _finalize():
            pooled = acc_ref[...] * inv_hw                            # mean over H*W
            out = jnp.dot(pooled, wf_ref[...],
                          preferred_element_type=jnp.float32) + bf_ref[...]
            o_ref[0] = out

    return kernel


# ---------------------------------------------------------------------------
# Glue: im2col (3x3, stride 1, padding 1) in plain JAX  -> (B, H*W, 9*C)
# ---------------------------------------------------------------------------
def extract_patches_3x3(x_nhwc):
    B, H, W, C = x_nhwc.shape
    xp = jnp.pad(x_nhwc, ((0, 0), (1, 1), (1, 1), (0, 0)))
    taps = [xp[:, dh:dh + H, dw:dw + W, :] for dh in range(3) for dw in range(3)]
    p = jnp.stack(taps, axis=3)               # (B, H, W, 9, C)   tap order = (dh, dw)
    return p.reshape(B, H * W, 9 * C)         # (B, H*W, 9*C)     row order = (dh, dw, c_in)


def torch_conv_weight_to_patch_layout(w_oihw):
    """PyTorch Conv2d weight (C_out, C_in, kh, kw) -> (kh*kw*C_in, C_out).

    Row ordering matches extract_patches_3x3: (dh, dw, c_in)."""
    c_out, c_in, kh, kw = w_oihw.shape
    return jnp.transpose(w_oihw, (2, 3, 1, 0)).reshape(kh * kw * c_in, c_out)


def _round_up(n, m):
    return ((n + m - 1) // m) * m


def _pick_spatial_tile(s, row_bytes, budget_bytes=8 << 20):
    """Largest spatial tile whose double-buffered patch slab fits the budget.

    Budget (8 MiB) is chosen to fit v5e's 16 MiB scoped-VMEM default (and hence
    also v6e/v7x) together with the resident weights.  Prefer multiples of 16
    (bf16 sublane packing), fall back to 8, else the full extent."""
    cap = max(16, budget_bytes // (2 * row_bytes))
    if s <= cap:
        return s                     # single step: whole image per grid point
    best = None
    for t in range(16, min(cap, s) + 1, 16):
        if s % t == 0:
            best = t
    if best is None:
        for t in range(8, min(cap, s) + 1, 8):
            if s % t == 0:
                best = t
    return best if best is not None else s


def encoder_forward(x_nchw, params):
    """Forward pass of Encoder(encoder)(x).  x_nchw: (B, C_in, H, W) float32."""
    w_conv, b_conv, w_fc, b_fc = params       # w_conv: (9*C_in, C_mid) patch layout
    B, C, H, W = x_nchw.shape
    K, C_mid = w_conv.shape
    D_out = w_fc.shape[1]
    S = H * W

    # Lane alignment: pad ONLY the output-channel dims to 128 (lane-dense MXU
    # output + unmasked stores).  The contraction dim K stays unpadded in HBM.
    Np = _round_up(C_mid, 128)
    Dp = _round_up(D_out, 128)
    TILE_S = _pick_spatial_tile(S, row_bytes=K * 2)
    n_s = pl.cdiv(S, TILE_S)
    assert S % TILE_S == 0, "spatial tile must divide H*W"

    # ---- operand prep (zero padding is exact; bf16 matmul inputs, f32 accum) ----
    x_nhwc = jnp.transpose(x_nchw, (0, 2, 3, 1))                 # NCHW -> NHWC
    patches = extract_patches_3x3(x_nhwc).astype(jnp.bfloat16)   # (B, S, K) bf16, unpadded K
    wc = jnp.pad(w_conv, ((0, 0), (0, Np - C_mid))).astype(jnp.bfloat16)   # (K, Np)
    bc = jnp.pad(b_conv, ((0, 0), (0, Np - C_mid)))              # (1, Np) f32
    wf = jnp.pad(w_fc, ((0, Np - C_mid), (0, Dp - D_out)))       # (Np, Dp) f32
    bf = jnp.pad(b_fc, ((0, 0), (0, Dp - D_out)))                # (1, Dp) f32

    kernel = _make_fused_kernel(1.0 / float(S))

    cost = pl.CostEstimate(
        flops=2 * B * S * K * Np + 2 * B * Np * Dp,
        transcendentals=0,
        bytes_accessed=(patches.size * 2 + wc.size * 2
                        + (bc.size + wf.size + bf.size + B * Dp) * 4),
    )

    # TODO(synk): if B == 1 on v7x, split the spatial axis into a leading
    # "parallel" axis (two partial accumulators merged at the end) so both
    # TensorCores are used.
    out_padded = pl.pallas_call(
        kernel,
        out_shape=jax.ShapeDtypeStruct((B, 1, Dp), jnp.float32),
        grid_spec=pltpu.PrefetchScalarGridSpec(
            num_scalar_prefetch=0,
            grid=(B, n_s),
            in_specs=[
                pl.BlockSpec((1, TILE_S, K), lambda b, s: (b, s, 0)),   # patches tile (streamed)
                pl.BlockSpec((K, Np), lambda b, s: (0, 0)),             # conv weight (resident)
                pl.BlockSpec((1, Np), lambda b, s: (0, 0)),             # conv bias   (resident)
                pl.BlockSpec((Np, Dp), lambda b, s: (0, 0)),            # fc weight   (resident)
                pl.BlockSpec((1, Dp), lambda b, s: (0, 0)),             # fc bias     (resident)
            ],
            out_specs=pl.BlockSpec((1, 1, Dp), lambda b, s: (b, 0, 0)),
            scratch_shapes=[pltpu.VMEM((1, Np), jnp.float32)],          # pooling accumulator
        ),
        compiler_params=pltpu.CompilerParams(
            dimension_semantics=("parallel", "arbitrary")),
        cost_estimate=cost,
    )(patches, wc, bc, wf, bf)

    return out_padded.reshape(B, Dp)[:, :D_out]


def init_params(key, c_in, c_mid, d_out):
    k1, k2, k3, k4 = jax.random.split(key, 4)
    # Conv weight generated in PyTorch Conv2d layout, then converted explicitly.
    w_conv_torch = jax.random.normal(k1, (c_mid, c_in, 3, 3), jnp.float32) * 0.05
    w_conv = torch_conv_weight_to_patch_layout(w_conv_torch)     # (9*c_in, c_mid)
    b_conv = jax.random.normal(k2, (1, c_mid), jnp.float32) * 0.01
    w_fc = jax.random.normal(k3, (c_mid, d_out), jnp.float32) * 0.05
    b_fc = jax.random.normal(k4, (1, d_out), jnp.float32) * 0.01
    return w_conv, b_conv, w_fc, b_fc


if __name__ == "__main__":
    B, C_in, H, W = 2, 4, 16, 16
    C_mid, D_out = 32, 64

    key = jax.random.PRNGKey(0)
    kx, kp = jax.random.split(key)
    x = jax.random.normal(kx, (B, C_in, H, W), jnp.float32)      # NCHW like PyTorch
    params = init_params(kp, C_in, C_mid, D_out)

    out = jax.jit(encoder_forward)(x, params)
    out = jax.block_until_ready(out)

    # Pure-JAX reference (conv operands rounded to bf16 to match the MXU path).
    w_conv, b_conv, w_fc, b_fc = params
    patches = extract_patches_3x3(jnp.transpose(x, (0, 2, 3, 1)))        # (B, S, 9*C_in)
    pb = patches.astype(jnp.bfloat16).astype(jnp.float32)
    wb = w_conv.astype(jnp.bfloat16).astype(jnp.float32)
    conv = jnp.maximum(
        jnp.einsum("bsk,kc->bsc", pb, wb, precision=jax.lax.Precision.HIGHEST)
        + b_conv, 0.0)                                                   # (B, S, C_mid)
    ref = jnp.dot(conv.mean(axis=1), w_fc,
                  precision=jax.lax.Precision.HIGHEST) + b_fc            # (B, D_out)

    assert out.shape == (B, D_out)
    err = float(jnp.max(jnp.abs(out - ref)))
    assert jnp.allclose(out, ref, atol=2e-3, rtol=2e-3), err

    print("KERNEL_OK")
</pallas_src>

<mosaic_0001>
module attributes {stable_mosaic.version = 11 : i64} {
  func.func @kernel(%arg0: i32, %arg1: i32, %arg2: memref<1x256x36xbf16, #tpu.memory_space<vmem>>, %arg3: memref<36x128xbf16, #tpu.memory_space<vmem>>, %arg4: memref<1x128xf32, #tpu.memory_space<vmem>>, %arg5: memref<128x128xf32, #tpu.memory_space<vmem>>, %arg6: memref<1x128xf32, #tpu.memory_space<vmem>>, %arg7: memref<1x1x128xf32, #tpu.memory_space<vmem>>, %arg8: memref<1x128xf32, #tpu.memory_space<vmem>>) attributes {dimension_semantics = [#tpu.dimension_semantics<parallel>, #tpu.dimension_semantics<arbitrary>], iteration_bounds = array<i64: 2, 1>, scalar_prefetch = 0 : i64, scratch_operands = 1 : i64, tpu.core_type = #tpu.core_type<tc>, window_params = [{transform_indices = @transform_0, window_bounds = array<i64: 1, 256, 36>}, {pipeline_mode = #tpu.pipeline_mode<synchronous>, transform_indices = @transform_1, window_bounds = array<i64: 36, 128>}, {pipeline_mode = #tpu.pipeline_mode<synchronous>, transform_indices = @transform_2, window_bounds = array<i64: 1, 128>}, {pipeline_mode = #tpu.pipeline_mode<synchronous>, transform_indices = @transform_3, window_bounds = array<i64: 128, 128>}, {pipeline_mode = #tpu.pipeline_mode<synchronous>, transform_indices = @transform_4, window_bounds = array<i64: 1, 128>}, {transform_indices = @transform_5, window_bounds = array<i64: 1, 1, 128>}]} {
    %c0_i32 = arith.constant 0 : i32
    %0 = arith.cmpi eq, %arg1, %c0_i32 : i32
    %1 = arith.extui %0 : i1 to i32
    %c0_i32_0 = arith.constant 0 : i32
    %2 = arith.cmpi ne, %1, %c0_i32_0 : i32
    scf.if %2 {
      %cst_15 = arith.constant 0.000000e+00 : f32
      %20 = vector.broadcast %cst_15 : f32 to vector<1x128xf32>
      %c0_16 = arith.constant 0 : index
      %c0_17 = arith.constant 0 : index
      %21 = vector.load %arg8[%c0_16, %c0_17] : memref<1x128xf32, #tpu.memory_space<vmem>>, vector<1x128xf32>
      tpu.vector_store %arg8[%c0_16, %c0_17], %20 {strides = array<i32>} : memref<1x128xf32, #tpu.memory_space<vmem>>, vector<1x128xf32>,
    } else {
    }
    %c0 = arith.constant 0 : index
    %c0_1 = arith.constant 0 : index
    %c0_2 = arith.constant 0 : index
    %3 = vector.load %arg2[%c0, %c0_1, %c0_2] : memref<1x256x36xbf16, #tpu.memory_space<vmem>>, vector<1x256x36xbf16>
    %4 = vector.shape_cast %3 : vector<1x256x36xbf16> to vector<256x36xbf16>
    %c0_3 = arith.constant 0 : index
    %c0_4 = arith.constant 0 : index
    %5 = vector.load %arg3[%c0_3, %c0_4] : memref<36x128xbf16, #tpu.memory_space<vmem>>, vector<36x128xbf16>
    %cst = arith.constant dense<0.000000e+00> : vector<256x128xf32>
    %6 = tpu.matmul %4, %5, %cst {dimension_numbers = #tpu.dot_dimension_numbers<[1], [0], [0], [1], [0, 0, 1, 1], [], []>} : vector<256x36xbf16>, vector<36x128xbf16>, vector<256x128xf32> -> vector<256x128xf32>
    %c0_5 = arith.constant 0 : index
    %c0_6 = arith.constant 0 : index
    %7 = vector.load %arg4[%c0_5, %c0_6] : memref<1x128xf32, #tpu.memory_space<vmem>>, vector<1x128xf32>
    %8 = vector.broadcast %7 : vector<1x128xf32> to vector<256x128xf32>
    %9 = arith.addf %6, %8 : vector<256x128xf32>
    %cst_7 = arith.constant 0.000000e+00 : f32
    %10 = vector.broadcast %cst_7 : f32 to vector<256x128xf32>
    %11 = arith.maximumf %9, %10 : vector<256x128xf32>
    %c0_8 = arith.constant 0 : index
    %c0_9 = arith.constant 0 : index
    %12 = vector.load %arg8[%c0_8, %c0_9] : memref<1x128xf32, #tpu.memory_space<vmem>>, vector<1x128xf32>
    %cst_10 = arith.constant dense<0.000000e+00> : vector<128xf32>
    %13 = vector.multi_reduction <add>, %11, %cst_10 [0] : vector<256x128xf32> to vector<128xf32>
    %14 = vector.shape_cast %13 : vector<128xf32> to vector<1x128xf32>
    %15 = arith.addf %12, %14 : vector<1x128xf32>
    %c0_11 = arith.constant 0 : index
    %c0_12 = arith.constant 0 : index
    %16 = vector.load %arg8[%c0_11, %c0_12] : memref<1x128xf32, #tpu.memory_space<vmem>>, vector<1x128xf32>
    tpu.vector_store %arg8[%c0_11, %c0_12], %15 {strides = array<i32>} : memref<1x128xf32, #tpu.memory_space<vmem>>, vector<1x128xf32>,
    %c0_i32_13 = arith.constant 0 : i32
    %17 = arith.cmpi eq, %arg1, %c0_i32_13 : i32
    %18 = arith.extui %17 : i1 to i32
    %c0_i32_14 = arith.constant 0 : i32
    %19 = arith.cmpi ne, %18, %c0_i32_14 : i32
    scf.if %19 {
      %c0_15 = arith.constant 0 : index
      %c0_16 = arith.constant 0 : index
      %20 = vector.load %arg8[%c0_15, %c0_16] : memref<1x128xf32, #tpu.memory_space<vmem>>, vector<1x128xf32>
      %cst_17 = arith.constant 3.906250e-03 : f32
      %21 = vector.broadcast %cst_17 : f32 to vector<1x128xf32>
      %22 = arith.mulf %20, %21 : vector<1x128xf32>
      %c0_18 = arith.constant 0 : index
      %c0_19 = arith.constant 0 : index
      %23 = vector.load %arg5[%c0_18, %c0_19] : memref<128x128xf32, #tpu.memory_space<vmem>>, vector<128x128xf32>
      %cst_20 = arith.constant dense<0.000000e+00> : vector<1x128xf32>
      %24 = tpu.matmul %22, %23, %cst_20 {dimension_numbers = #tpu.dot_dimension_numbers<[1], [0], [0], [1], [0, 0, 1, 1], [], []>} : vector<1x128xf32>, vector<128x128xf32>, vector<1x128xf32> -> vector<1x128xf32>
      %c0_21 = arith.constant 0 : index
      %c0_22 = arith.constant 0 : index
      %25 = vector.load %arg6[%c0_21, %c0_22] : memref<1x128xf32, #tpu.memory_space<vmem>>, vector<1x128xf32>
      %26 = arith.addf %24, %25 : vector<1x128xf32>
      %c0_23 = arith.constant 0 : index
      %c0_24 = arith.constant 0 : index
      %c0_25 = arith.constant 0 : index
      %27 = vector.load %arg7[%c0_23, %c0_24, %c0_25] : memref<1x1x128xf32, #tpu.memory_space<vmem>>, vector<1x1x128xf32>
      %28 = vector.shape_cast %27 : vector<1x1x128xf32> to vector<1x128xf32>
      %29 = vector.shape_cast %26 : vector<1x128xf32> to vector<1x1x128xf32>
      tpu.vector_store %arg7[%c0_23, %c0_24, %c0_25], %29 {strides = array<i32>} : memref<1x1x128xf32, #tpu.memory_space<vmem>>, vector<1x1x128xf32>,
    } else {
    }
    return
  }
  func.func @transform_0(%arg0: i32, %arg1: i32) -> (i32, i32, i32) {
    %c0_i32 = arith.constant 0 : i32
    %c0_i32_0 = arith.constant 0 : i32
    return %arg0, %arg1, %c0_i32 : i32, i32, i32
  }
  func.func @transform_1(%arg0: i32, %arg1: i32) -> (i32, i32) {
    %c0_i32 = arith.constant 0 : i32
    %c0_i32_0 = arith.constant 0 : i32
    %c0_i32_1 = arith.constant 0 : i32
    return %c0_i32, %c0_i32_0 : i32, i32
  }
  func.func @transform_2(%arg0: i32, %arg1: i32) -> (i32, i32) {
    %c0_i32 = arith.constant 0 : i32
    %c0_i32_0 = arith.constant 0 : i32
    %c0_i32_1 = arith.constant 0 : i32
    return %c0_i32, %c0_i32_0 : i32, i32
  }
  func.func @transform_3(%arg0: i32, %arg1: i32) -> (i32, i32) {
    %c0_i32 = arith.constant 0 : i32
    %c0_i32_0 = arith.constant 0 : i32
    %c0_i32_1 = arith.constant 0 : i32
    return %c0_i32, %c0_i32_0 : i32, i32
  }
  func.func @transform_4(%arg0: i32, %arg1: i32) -> (i32, i32) {
    %c0_i32 = arith.constant 0 : i32
    %c0_i32_0 = arith.constant 0 : i32
    %c0_i32_1 = arith.constant 0 : i32
    return %c0_i32, %c0_i32_0 : i32, i32
  }
  func.func @transform_5(%arg0: i32, %arg1: i32) -> (i32, i32, i32) {
    %c0_i32 = arith.constant 0 : i32
    %c0_i32_0 = arith.constant 0 : i32
    %c0_i32_1 = arith.constant 0 : i32
    return %arg0, %c0_i32, %c0_i32_0 : i32, i32, i32
  }
}

</mosaic_0001>

<bundles_post_ra>
// kernel: encoder_forward.1
= control target key start
LH: loop header
LB: loop body
LE: loop exit
PB: predicated region body
PF: predicated region fallthrough
CT: control target
= control target key end

     0   :  { %10 = vsyncpa [#allocation4], 0  ;;  %s1282_s0 = inlined_call_operand.vmem [shape: bf16[2,256,36], index: 0, kind: input, shape index: {}]   ;;  %s1283_s1 = inlined_call_operand.vmem [shape: bf16[36,128], index: 1, kind: input, shape index: {}]   ;;  %s1284_s2 = inlined_call_operand.vmem [shape: f32[1,128], index: 2, kind: input, shape index: {}]   ;;  %s1285_s3 = inlined_call_operand.vmem [shape: f32[128,128], index: 3, kind: input, shape index: {}]   ;;  %s1286_s4 = inlined_call_operand.vmem [shape: f32[1,128], index: 4, kind: input, shape index: {}]   ;;  %s1287_s5 = inlined_call_operand.hbm [shape: f32[2,1,128], index: 5, kind: output, shape index: {}]  }
   0x1   :  { %12 = vsyncpa [#allocation4 + $0x1], 0  ;;  %s1024_s18 = smov 0   ;;  %s1026_s19 = smov 0  }
   0x2   :  { %s1028_s20 = smov 0   ;;  %s1030_s21 = smov 0  }
   0x3   :  { %s1032_s22 = smov 0   ;;  %s1034_s23 = smov 0  }
   0x4 LB: > { %s731_s24 = sadd.s32 4294967295, %s991_s23   ;;  %s732_s25 = sadd.s32 4294967294, %s991_s23   ;;  %s991_s23 = sphi %s1034_s23, %s18_s23   ;;  %s987_s22 = sphi %s1032_s22, %s1294_s22   ;;  %s983_s21 = sphi %s1030_s21, %s1293_s21   ;;  %s979_s20 = sphi %s1028_s20, %s1292_s20   ;;  %s975_s19 = sphi %s1026_s19, %s1291_s19   ;;  %s971_s18 = sphi %s1024_s18, %s1290_s18  }
   0x5   : > { %s30_s26 = sadd.s32 1, %s987_s22  ;;  %s149_s27 = sadd.s32 1, %s979_s20 }
   0x6   : > { %p32_p0 = scmp.ge.s32.totalorder %s30_s26, 2  ;;  %p159_p1 = scmp.ne.s32.totalorder %s979_s20, %s975_s19 }
   0x7   : > { %p160_p2 = scmp.eq.s32.totalorder %s731_s24, 1  ;;  %p165_p3 = scmp.ne.s32.totalorder %s975_s19, %s971_s18 }
   0x8   : > { %s1296_s26 = smov (%p32_p0, %s30_s26), 0  ;;  %p166_p5 = scmp.eq.s32.totalorder %s732_s25, 1 }
   0x9   : > { %p1064_p4 = por %p160_p2, %p159_p1  ;;  %s146_s29 = ssub.s32 %s987_s22, %s1296_s26 }
   0xa   : > { %p735_p6 = scmp.ge.s32.totalorder %s991_s23, 1  ;;  %p147_p7 = scmp.eq.s32.totalorder %s146_s29, 0 }
   0xb   : > { %p1071_p8 = por %p166_p5, %p165_p3  ;;  %p209_p9 = scmp.lt.s32.totalorder %s991_s23, 3 }
   0xc   : > { %s1077_s6 = scalar_select %p147_p7, %s979_s20, %s149_s27  }
   0xd   : > { %p210_p10 = pnand %p735_p6, %p209_p9 }
   0xe   : > { %p241_p11 = scmp.lt.s32.totalorder (!%p210_p10), %s983_s21, 1  ;;  %s238_s7 = sand.u32 (!%p210_p10), 1, %s975_s19  }
   0xf   : > { %213 = sbr.rel (%p210_p10) target bundleno = 440 (0x1b8), region = 40  ;;  %s658_s10 = scalar_lea.hbm (!%p210_p10), %s1287_s5, %s983_s21 }
  0x10   : > { %s239_s13 = scalar_lea.vmem (!%p210_p10), [#allocation3], %s238_s7  ;;  %s662_s15 = sshll.u32 (!%p210_p10), %s658_s10, 4  ;;  %s663_s15 = int_to_ptr.hbm [resolvable:$true] %s662_s15 }
  0x11   : > { %s660_s14 = sshll.u32 (!%p210_p10), %s239_s13, 4  ;;  %s650_s16 = scalar_lea.sflag (!%p210_p10), [#allocation4], %s238_s7  ;;  %s661_s14 = int_to_ptr.vmem [resolvable:$true] %s660_s14 }
  0x12   : > { %s933_s27 = scalar_lea.hbm (!%p210_p10), %s1287_s5, 2 }
  0x14   : > { %v292_v0 = vld [vmem:[%s1283_s1 + $0x10] sm:$0x3]  ;;  %vm441_vm0 = vcmask 1041408   ;;  %s242_s9 = scalar_select %p241_p11, %s983_s21, 1  ;;  %v846_v4 = vld [vmem:[%s1283_s1 + $0x8] sm:$0xff]  ;;  %v845_v5 = vld [vmem:[%s1283_s1] sm:$0xff] }
  0x15   : > { %v386_v1 = vunpack.c.l.b16 %v292_v0  ;;  %vm392_vm1 = vcmask 293888   ;;  %v1140_v36 = vld [vmem:[%s1284_s2] ss:$0 sm:$0xff] }
  0x16   : > { %s828_s12 = sshll.u32 %s242_s9, 7 }
  0x17   : > { %v389_v2 = vpack.c.b16 %v386_v1, %v386_v1  ;;  %s1093_s17 = scalar_lea.vmem %s1282_s0, %s828_s12 }
  0x18   : > { %v829_v6 = vld [vmem:[%s1093_s17] sm:$0xff]  ;;  %v836_v7 = vld [vmem:[%s1093_s17 + $0x38] sm:$0xff]  ;;  %v830_v9 = vld [vmem:[%s1093_s17 + $0x8] sm:$0xff] }
  0x19   : > { %v443_v3 = vsel %vm441_vm0, %v389_v2, 0  ;;  %v841_v8 = vld [vmem:[%s1093_s17 + $0x60] sm:$0xff]  ;;  %v834_v11 = vld [vmem:[%s1093_s17 + $0x28] sm:$0xff]  ;;  %v831_v13 = vld [vmem:[%s1093_s17 + $0x10] sm:$0xff] }
  0x1a   : > { %450 = vmatpush.bf16.msra.mxu0 %v443_v3  ;;  %848 = vmatpush.bf16.msra.mxu2 %v443_v3  ;;  %v837_v10 = vld [vmem:[%s1093_s17 + $0x40] sm:$0xff]  ;;  %v842_v12 = vld [vmem:[%s1093_s17 + $0x68] sm:$0xff]  ;;  %v835_v15 = vld [vmem:[%s1093_s17 + $0x30] sm:$0xff] }
  0x1b   : > { %849 = vmatpush.bf16.msra.mxu3 %v443_v3  ;;  %847 = vmatpush.bf16.msra.mxu1 %v443_v3  ;;  %v838_v14 = vld [vmem:[%s1093_s17 + $0x48] sm:$0xff]  ;;  %v843_v16 = vld [vmem:[%s1093_s17 + $0x70] sm:$0xff]  ;;  %v832_v17 = vld [vmem:[%s1093_s17 + $0x18] sm:$0xff] }
  0x1c   : > { %v839_v18 = vld [vmem:[%s1093_s17 + $0x50] sm:$0xff]  ;;  %v844_v19 = vld [vmem:[%s1093_s17 + $0x78] sm:$0xff]  ;;  %v833_v20 = vld [vmem:[%s1093_s17 + $0x20] sm:$0xff] }
  0x1d   : > { %v840_v21 = vld [vmem:[%s1093_s17 + $0x58] sm:$0xff]  ;;  %s927_s17 = sshra.s32 %s663_s15, 4  ;;  %s928_s17 = int_to_ptr.hbm [resolvable:$true] %s927_s17 }
  0x1e   : > { %451 = vmatpush.bf16.msra.mxu0 %v846_v4  ;;  %851 = vmatpush.bf16.msra.mxu2 %v846_v4  ;;  %s929_s24 = scalar_lea.hbm %s928_s17, 1  ;;  %p934_p1 = scmp.lt.s32.totalorder %s928_s17, %s1287_s5 }
  0x1f   : > { %852 = vmatpush.bf16.msra.mxu3 %v846_v4  ;;  %850 = vmatpush.bf16.msra.mxu1 %v846_v4  ;;  %p930_p12 = scmp.ne.s32.totalorder %s928_s17, %s929_s24  ;;  %p935_p2 = scmp.lt.s32.totalorder %s933_s27, %s929_s24 }
  0x21   : > { %p931_p13 = pnand %p930_p12, %p1064_p4  ;;  %p936_p3 = por %p935_p2, %p934_p1 }
  0x22   : > { %452 = vmatpush.bf16.msra.mxu0 %v845_v5  ;;  %854 = vmatpush.bf16.msra.mxu2 %v845_v5 }
  0x23   : > { %855 = vmatpush.bf16.msra.mxu3 %v845_v5  ;;  %853 = vmatpush.bf16.msra.mxu1 %v845_v5  ;;  %p932_p0 = pneg %p931_p13 }
  0x25   : > { %810 = vmatmul.msk.bf16.vlgmr.msra.gmra.mxu0 %vm392_vm1, %v829_v6  ;;  %817 = vmatmul.msk.bf16.vlgmr.msra.gmra.mxu2 %vm392_vm1, %v836_v7  ;;  %p937_p5 = pnand %p936_p3, %p932_p0 }
  0x26   : > { %822 = vmatmul.msk.bf16.vlgmr.msra.gmra.mxu3 %vm392_vm1, %v841_v8  ;;  %815 = vmatmul.msk.bf16.vlgmr.msra.gmra.mxu1 %vm392_vm1, %v834_v11 }
  0x35   : > { %811 = vmatmul.msk.bf16.gmra.mxu0 %vm392_vm1, %v830_v9  ;;  %818 = vmatmul.msk.bf16.gmra.mxu2 %vm392_vm1, %v837_v10 }
  0x36   : > { %823 = vmatmul.msk.bf16.gmra.mxu3 %vm392_vm1, %v842_v12  ;;  %816 = vmatmul.msk.bf16.gmra.mxu1 %vm392_vm1, %v835_v15 }
  0x45   : > { %812 = vmatmul.msk.bf16.gmra.mxu0 %vm392_vm1, %v831_v13  ;;  %819 = vmatmul.msk.bf16.gmra.mxu2 %vm392_vm1, %v838_v14 }
  0x46   : > { %824 = vmatmul.msk.bf16.gmra.mxu3 %vm392_vm1, %v843_v16 }
  0x55   : > { %813 = vmatmul.msk.bf16.gmra.mxu0 %vm392_vm1, %v832_v17  ;;  %820 = vmatmul.msk.bf16.gmra.mxu2 %vm392_vm1, %v839_v18 }
  0x56   : > { %825 = vmatmul.msk.bf16.gmra.mxu3 %vm392_vm1, %v844_v19 }
  0x65   : > { %814 = vmatmul.msk.bf16.gmra.mxu0 %vm392_vm1, %v833_v20  ;;  %821 = vmatmul.msk.bf16.gmra.mxu2 %vm392_vm1, %v840_v21 }
  0xa2   : > { %v454_v22 = vpop.f32.mrf.mxu0 }
  0xa3   : > { %v479_v33 = vpop.f32.mrf.mxu1  ;;  %v455_v39 = vadd.f32 %v1140_v36, %v454_v22 }
  0xa4   : > { %v480_v7 = vadd.f32 %v1140_v36, %v479_v33  ;;  %v626_v33 = vld [vmem:[%s1285_s3 + $0x78] sm:$0xff] }
  0xa5   : > { %v534_v46 = vmax.f32 %v455_v39, 0.0  ;;  %628 = vmatpush.msrb.mxu1 %v626_v33  ;;  %v611_v33 = vld [vmem:[%s1285_s3] sm:$0xff] }
  0xa6   : > { %v544_v15 = vmax.f32 %v480_v7, 0.0 }
  0xa8   : > { %v489_v23 = vpop.f32.mrf.mxu2 }
  0xa9   : > { %v1133_v32 = vpop.f32.mrf.mxu3  ;;  %v490_v21 = vadd.f32 %v1140_v36, %v489_v23  ;;  %v625_v23 = vld [vmem:[%s1285_s3 + $0x70] sm:$0xff] }
  0xaa   : > { %v456_v24 = vpop.f32.mrf.mxu0  ;;  %629 = vmatpush.msrb.mxu1 %v625_v23 }
  0xab   : > { %v457_v38 = vadd.f32 %v1140_v36, %v456_v24  ;;  %v481_v41 = vpop.f32.mrf.mxu1 }
  0xac   : > { %v482_v10 = vadd.f32 %v1140_v36, %v481_v41 }
  0xad   : > { %v535_v44 = vmax.f32 %v457_v38, 0.0 }
  0xae   : > { %v545_v18 = vmax.f32 %v482_v10, 0.0 }
  0xaf   : > { %v567_v49 = vadd.f32 %v535_v44, %v534_v46  ;;  %v624_v44 = vld [vmem:[%s1285_s3 + $0x68] sm:$0xff] }
  0xb0   : > { %v1127_v26 = vpop.f32.mrf.mxu2  ;;  %630 = vmatpush.msrb.mxu1 %v624_v44 }
  0xb1   : > { %v1142_v37 = vpop.f32.mrf.mxu3 }
  0xb2   : > { %v459_v25 = vpop.f32.mrf.mxu0 }
  0xb3   : > { %v460_v40 = vadd.f32 %v1140_v36, %v459_v25  ;;  %v484_v60 = vpop.f32.mrf.mxu1 }
  0xb4   : > { %v485_v16 = vadd.f32 %v1140_v36, %v484_v60 }
  0xb5   : > { %v536_v47 = vmax.f32 %v460_v40, 0.0 }
  0xb6   : > { %v546_v22 = vmax.f32 %v485_v16, 0.0 }
  0xb7   : > { %v568_v53 = vadd.f32 %v567_v49, %v536_v47 }
  0xb8   : > { %v1129_v28 = vpop.f32.mrf.mxu2 }
  0xb9   : > { %v1152_v52 = vpop.f32.mrf.mxu3  ;;  %v495_v38 = vadd.f32 %v1140_v36, %v1129_v28 }
  0xba   : > { %v461_v27 = vpop.f32.mrf.mxu0 }
  0xbb   : > { %v462_v45 = vadd.f32 %v1140_v36, %v461_v27  ;;  %v486_v13 = vpop.f32.mrf.mxu1  ;;  %v492_v27 = vadd.f32 %v1140_v36, %v1127_v26  ;;  %v550_v28 = vmax.f32 %v495_v38, 0.0 }
  0xbc   : > { %v487_v20 = vadd.f32 %v1140_v36, %v486_v13 }
  0xbd   : > { %v537_v50 = vmax.f32 %v462_v45, 0.0  ;;  %v549_v41 = vmax.f32 %v492_v27, 0.0  ;;  %v993_v45 = vmov 0.0   ;;  %v612_v27 = vld [vmem:[%s1285_s3 + $0x8] sm:$0xff] }
  0xbe   : > { %255 = vst [vmem:[#allocation2] sm:$0x1] %v993_v45 }
  0xbf   : > { %v569_v57 = vadd.f32 %v568_v53, %v537_v50 }
  0xc0   : > { %v1131_v30 = vpop.f32.mrf.mxu2 }
  0xc1   : > { %v1157_v6 = vpop.f32.mrf.mxu3  ;;  %v497_v26 = vadd.f32 %v1140_v36, %v1131_v30 }
  0xc2   : > { %v464_v29 = vpop.f32.mrf.mxu0 }
  0xc3   : > { %v465_v48 = vadd.f32 %v1140_v36, %v464_v29  ;;  %v547_v29 = vmax.f32 %v487_v20, 0.0  ;;  %v551_v49 = vmax.f32 %v497_v26, 0.0 }
  0xc5   : > { %v538_v54 = vmax.f32 %v465_v48, 0.0  ;;  %v623_v48 = vld [vmem:[%s1285_s3 + $0x60] sm:$0xff] }
  0xc6   : > { %631 = vmatpush.msrb.mxu1 %v623_v48 }
  0xc7   : > { %v570_v62 = vadd.f32 %v569_v57, %v538_v54 }
  0xc8   : > { %v1135_v34 = vpop.f32.mrf.mxu2 }
  0xc9   : > { %v1165_v25 = vpop.f32.mrf.mxu3  ;;  %v500_v46 = vadd.f32 %v1140_v36, %v1135_v34 }
  0xca   : > { %v466_v31 = vpop.f32.mrf.mxu0 }
  0xcb   : > { %v467_v51 = vadd.f32 %v1140_v36, %v466_v31  ;;  %v552_v54 = vmax.f32 %v500_v46, 0.0 }
  0xcd   : > { %v539_v58 = vmax.f32 %v467_v51, 0.0  ;;  %v622_v51 = vld [vmem:[%s1285_s3 + $0x58] sm:$0xff] }
  0xce   : > { %632 = vmatpush.msrb.mxu1 %v622_v51 }
  0xcf   : > { %v571_v1 = vadd.f32 %v570_v62, %v539_v58 }
  0xd0   : > { %v1147_v43 = vpop.f32.mrf.mxu2 }
  0xd1   : > { %v502_v30 = vadd.f32 %v1140_v36, %v1147_v43  ;;  %v526_v53 = vpop.f32.mrf.mxu3 }
  0xd2   : > { %v469_v35 = vpop.f32.mrf.mxu0 }
  0xd3   : > { %v470_v55 = vadd.f32 %v1140_v36, %v469_v35  ;;  %v548_v35 = vmax.f32 %v490_v21, 0.0  ;;  %v553_v57 = vmax.f32 %v502_v30, 0.0  ;;  %v613_v21 = vld [vmem:[%s1285_s3 + $0x10] sm:$0xff] }
  0xd5   : > { %v540_v63 = vmax.f32 %v470_v55, 0.0 }
  0xd7   : > { %v572_v3 = vadd.f32 %v571_v1, %v540_v63 }
  0xd8   : > { %v504_v61 = vpop.f32.mrf.mxu2 }
  0xd9   : > { %v505_v34 = vadd.f32 %v1140_v36, %v504_v61  ;;  %v529_v10 = vpop.f32.mrf.mxu3 }
  0xda   : > { %v471_v42 = vpop.f32.mrf.mxu0 }
  0xdb   : > { %v472_v59 = vadd.f32 %v1140_v36, %v471_v42  ;;  %v554_v62 = vmax.f32 %v505_v34, 0.0 }
  0xdd   : > { %v541_v2 = vmax.f32 %v472_v59, 0.0  ;;  %v620_v59 = vld [vmem:[%s1285_s3 + $0x48] sm:$0xff] }
  0xdf   : > { %v573_v8 = vadd.f32 %v572_v3, %v541_v2 }
  0xe0   : > { %v506_v14 = vpop.f32.mrf.mxu2 }
  0xe1   : > { %v507_v58 = vadd.f32 %v1140_v36, %v506_v14  ;;  %v616_v14 = vld [vmem:[%s1285_s3 + $0x28] sm:$0xff] }
  0xe2   : > { %v474_v56 = vpop.f32.mrf.mxu0 }
  0xe3   : > { %v475_v0 = vadd.f32 %v1140_v36, %v474_v56  ;;  %v621_v56 = vld [vmem:[%s1285_s3 + $0x50] sm:$0xff]  ;;  %v555_v1 = vmax.f32 %v507_v58, 0.0 }
  0xe4   : > { %633 = vmatpush.msrb.mxu1 %v621_v56 }
  0xe5   : > { %v542_v4 = vmax.f32 %v475_v0, 0.0  ;;  %v619_v0 = vld [vmem:[%s1285_s3 + $0x40] sm:$0xff] }
  0xe6   : > { %634 = vmatpush.msrb.mxu1 %v620_v59 }
  0xe7   : > { %v574_v11 = vadd.f32 %v573_v8, %v542_v4  ;;  %v618_v4 = vld [vmem:[%s1285_s3 + $0x38] sm:$0xff] }
  0xe8   : > { %v509_v40 = vpop.f32.mrf.mxu2  ;;  %635 = vmatpush.msrb.mxu1 %v619_v0 }
  0xe9   : > { %v510_v61 = vadd.f32 %v1140_v36, %v509_v40 }
  0xea   : > { %v476_v5 = vpop.f32.mrf.mxu0  ;;  %636 = vmatpush.msrb.mxu1 %v618_v4 }
  0xeb   : > { %v477_v9 = vadd.f32 %v1140_v36, %v476_v5  ;;  %v515_v5 = vadd.f32 %v1140_v36, %v1133_v32  ;;  %v556_v8 = vmax.f32 %v510_v61, 0.0  ;;  %v520_v32 = vadd.f32 %v1140_v36, %v1152_v52 }
  0xed   : > { %v543_v12 = vmax.f32 %v477_v9, 0.0  ;;  %v617_v9 = vld [vmem:[%s1285_s3 + $0x30] sm:$0xff]  ;;  %v560_v52 = vmax.f32 %v520_v32, 0.0 }
  0xee   : > { %637 = vmatpush.msrb.mxu1 %v617_v9 }
  0xef   : > { %v575_v17 = vadd.f32 %v574_v11, %v543_v12  ;;  %v517_v11 = vadd.f32 %v1140_v36, %v1142_v37  ;;  %v614_v37 = vld [vmem:[%s1285_s3 + $0x18] sm:$0xff] }
  0xf0   : > { %v511_v60 = vpop.f32.mrf.mxu2  ;;  %638 = vmatpush.msrb.mxu1 %v616_v14 }
  0xf1   : > { %v576_v19 = vadd.f32 %v575_v17, %v544_v15  ;;  %v512_v3 = vadd.f32 %v1140_v36, %v511_v60  ;;  %v558_v15 = vmax.f32 %v515_v5, 0.0  ;;  %v615_v17 = vld [vmem:[%s1285_s3 + $0x20] sm:$0xff] }
  0xf2   : > { %639 = vmatpush.msrb.mxu1 %v615_v17 }
  0xf3   : > { %v577_v24 = vadd.f32 %v576_v19, %v545_v18  ;;  %v557_v13 = vmax.f32 %v512_v3, 0.0  ;;  %v559_v18 = vmax.f32 %v517_v11, 0.0  ;;  %v522_v19 = vadd.f32 %v1140_v36, %v1157_v6 }
  0xf4   : > { %640 = vmatpush.msrb.mxu1 %v614_v37 }
  0xf5   : > { %v578_v31 = vadd.f32 %v577_v24, %v546_v22  ;;  %v525_v22 = vadd.f32 %v1140_v36, %v1165_v25  ;;  %v530_v25 = vadd.f32 %v1140_v36, %v529_v10 }
  0xf6   : > { %641 = vmatpush.msrb.mxu1 %v613_v21 }
  0xf7   : > { %v579_v39 = vadd.f32 %v578_v31, %v547_v29  ;;  %v561_v29 = vmax.f32 %v522_v19, 0.0  ;;  %v527_v31 = vadd.f32 %v1140_v36, %v526_v53  ;;  %v562_v38 = vmax.f32 %v525_v22, 0.0 }
  0xf8   : > { %642 = vmatpush.msrb.mxu1 %v612_v27 }
  0xf9   : > { %v580_v42 = vadd.f32 %v579_v39, %v548_v35  ;;  %v531_v35 = vpop.f32.mrf.mxu3  ;;  %v563_v23 = vmax.f32 %v527_v31, 0.0 }
  0xfa   : > { %643 = vmatpush.msrb.mxu1 %v611_v33 }
  0xfb   : > { %v581_v47 = vadd.f32 %v580_v42, %v549_v41  ;;  %v532_v41 = vadd.f32 %v1140_v36, %v531_v35  ;;  %v564_v42 = vmax.f32 %v530_v25, 0.0  ;;  %v627_v36 = vld [vmem:[%s1286_s4] sm:$0x1] }
  0xfd   : > { %v582_v50 = vadd.f32 %v581_v47, %v550_v28  ;;  %v565_v45 = vmax.f32 %v532_v41, 0.0 }
  0xff   : > { %v583_v55 = vadd.f32 %v582_v50, %v551_v49  ;;  %v566_v50 = vld [vmem:[#allocation2] sm:$0x1] }
 0x101   : > { %v584_v43 = vadd.f32 %v583_v55, %v552_v54 }
 0x103   : > { %v585_v63 = vadd.f32 %v584_v43, %v553_v57 }
 0x105   : > { %v586_v2 = vadd.f32 %v585_v63, %v554_v62 }
 0x107   : > { %v587_v7 = vadd.f32 %v586_v2, %v555_v1 }
 0x109   : > { %v588_v12 = vadd.f32 %v587_v7, %v556_v8 }
 0x10b   : > { %v589_v16 = vadd.f32 %v588_v12, %v557_v13 }
 0x10d   : > { %v590_v20 = vadd.f32 %v589_v16, %v558_v15 }
 0x10f   : > { %v591_v24 = vadd.f32 %v590_v20, %v559_v18 }
 0x111   : > { %v592_v6 = vadd.f32 %v591_v24, %v560_v52 }
 0x113   : > { %v593_v39 = vadd.f32 %v592_v6, %v561_v29 }
 0x115   : > { %v594_v40 = vadd.f32 %v593_v39, %v562_v38 }
 0x117   : > { %v595_v26 = vadd.f32 %v594_v40, %v563_v23 }
 0x119   : > { %v596_v44 = vadd.f32 %v595_v26, %v564_v42 }
 0x11b   : > { %v597_v28 = vadd.f32 %v596_v44, %v565_v45 }
 0x11d   : > { %v598_v46 = vrot.slane %v597_v28, 4 }
 0x11f   : > { %v599_v47 = vadd.f32 %v598_v46, %v597_v28 }
 0x121   : > { %v600_v48 = vrot.slane %v599_v47, 2 }
 0x123   : > { %v601_v49 = vadd.f32 %v600_v48, %v599_v47 }
 0x125   : > { %v602_v30 = vrot.slane %v601_v49, 1 }
 0x127   : > { %v603_v51 = vadd.f32 %v602_v30, %v601_v49 }
 0x129   : > { %v604_v53 = vadd.f32 %v603_v51, %v566_v50 }
 0x12b   : > { %605 = vst [vmem:[#allocation2] sm:$0x1] %v604_v53 }
 0x132   : > { %v609_v54 = vld [vmem:[#allocation2] sm:$0x1] }
 0x133   : > { %v610_v34 = vmul.f32 0.00390625, %v609_v54 }
 0x135   : > { %644 = vmatmul.f32.vlgmr.msrb.gmra.mxu1 %v610_v34 }
 0x1b2   : > { %v645_v55 = vpop.f32.mrf.mxu1 }
 0x1b3   : > { %v646_v56 = vadd.f32 %v645_v55, %v627_v36 }
 0x1b5   : > { %648 = vst [vmem:[%s239_s13] sm:$0x1] %v646_v56 }
 0x1b6   : > { %940 = shalt.err (!%p937_p5)
}
 0x1b7   : > { %856 = dma.vmem_to_hbm [thread:$0]  (%p1064_p4), %s661_s14, 16, %s663_s15, %s650_s16  }
 0x1b8 PF: > { %p862_p6 = scmp.ge.s32.totalorder %s991_s23, 2  ;;  %s674_s7 = sand.u32 1, %s971_s18  }
 0x1b9   : > { %s675_s9 = scalar_lea.sflag [#allocation4], %s674_s7 }
 0x1ba   : > { %p859_p7 = pnand %p862_p6, %p1071_p8 }
 0x1bc   : > { %p860_p9 = pneg %p859_p7 }
 0x1be   : > { %966 = dma.done.wait (%p860_p9), %s675_s9, 16  }
 0x1bf   : > { %968 = vsyncadd (%p860_p9), %s675_s9, 4294967280  ;;  %s18_s23 = sadd.s32 1, %s991_s23   ;;  %s1290_s18 = smov %s975_s19 }
 0x1c0   : > { %p15_p10 = scmp.ge.s32.totalorder %s18_s23, 4   ;;  %s1291_s19 = smov %s979_s20 }
 0x1c1   : > { %s1292_s20 = smov %s1077_s6  ;;  %s1293_s21 = smov %s987_s22 }
 0x1c2   : > { %s1294_s22 = smov %s1296_s26  ;;  %17 = sbr.rel (!%p15_p10) target bundleno = 4 (0x4), region = 83 }
 0x1c7   :  { %680 = vsyncpa [#allocation4], 1 }
 0x1c8   :  { %682 = vsyncpa [#allocation4 + $0x1], 1 }

</bundles_post_ra>
